<compile_context>
chip_gen: v6e
topology: v6e:2x2x1
jax: 0.10.0
libtpu: 0.0.40
codegen_flags: <defaults>
</compile_context>

<pallas_src>
import functools

import jax
import jax.numpy as jnp
from jax.experimental import pallas as pl
from jax.experimental.pallas import tpu as pltpu


def _acc_tile_kernel(yp_ref, yt_ref, out_ref, *, ignore_index, total_rows,
                     block_rows):
    i = pl.program_id(0)
    logits = yp_ref[...]                      # (TM, C) native dtype
    labels = yt_ref[...]                      # (TM, 1) int32
    tm, c = logits.shape

    # argmax over the class (lane) axis, first maximal index on ties.
    col = jax.lax.broadcasted_iota(jnp.int32, (tm, c), 1)
    maxv = jnp.max(logits, axis=1, keepdims=True)                      # (TM, 1)
    pred = jnp.min(jnp.where(logits == maxv, col, jnp.int32(c)),
                   axis=1, keepdims=True)                              # (TM, 1)

    # Mask rows beyond the real array (partial last tile) and ignored labels.
    row = jax.lax.broadcasted_iota(jnp.int32, (tm, 1), 0) + i * block_rows
    valid = (labels != jnp.int32(ignore_index)) & (row < total_rows)
    weights = jnp.where(valid, 1.0, 0.0)                               # (TM, 1)
    correct = jnp.where(pred == labels, 1.0, 0.0) * weights            # (TM, 1)

    c_sum = jnp.sum(correct, axis=0, keepdims=True)                    # (1, 1)
    w_sum = jnp.sum(weights, axis=0, keepdims=True)                    # (1, 1)

    # Write the per-tile partial sums into this tile's (8, 128) output block:
    # lane 0 of sublane 0 = correct_sum, lane 1 = weight_sum, rest zeros.
    lane = jax.lax.broadcasted_iota(jnp.int32, (8, 128), 1)
    sub = jax.lax.broadcasted_iota(jnp.int32, (8, 128), 0)
    first = sub == 0
    out_ref[...] = (jnp.where(first & (lane == 0), c_sum, 0.0)
                    + jnp.where(first & (lane == 1), w_sum, 0.0))


def _choose_block_rows(m, c, itemsize):
    # ~4 MiB logits tile -> ~8 MiB double-buffered; fits default scoped VMEM
    # on v5e (16 MiB) and leaves plenty of headroom on v6e/v7x.
    target_bytes = 4 * 1024 * 1024
    tm = target_bytes // max(1, c * itemsize)
    tm = (tm // 8) * 8
    tm = max(8, min(1024, tm))
    if tm >= m:
        return m                      # single full-extent block (always legal)
    return tm


def accuracy(y_pred, y_true, *, ignore_index=-100, reduction='mean',
             block_rows=None):
    """Pallas implementation of poutyne Accuracy forward (mean/sum reduction)."""
    if reduction not in ('none', 'mean', 'sum'):
        raise ValueError("Reduction is not in ['none', 'mean', 'sum']")
    if reduction == 'none':
        # TODO(synk): 'none' reduction (per-element accuracy) not implemented.
        raise NotImplementedError("reduction='none' not implemented in kernel")

    c = y_pred.shape[1]
    if y_pred.ndim == 2:
        yp = y_pred                          # fast path: no layout change
    else:
        # TODO(synk): for K-dim inputs this class-last transpose is a separate
        # full-HBM XLA pass; fusing it into the kernel index_map is future work.
        perm = (0,) + tuple(range(2, y_pred.ndim)) + (1,)
        yp = jnp.transpose(y_pred, perm).reshape(-1, c)
    yt = y_true.reshape(-1, 1).astype(jnp.int32)
    m = yp.shape[0]

    if block_rows is None:
        tm = _choose_block_rows(m, c, yp.dtype.itemsize)
    else:
        tm = max(8, (int(block_rows) // 8) * 8)
        tm = m if tm >= m else tm
    num_tiles = pl.cdiv(m, tm)
    # TODO(synk): very large vocabularies (C*tm*itemsize >> VMEM) would need an
    # additional class-axis grid with a carried running max/argmax.

    partial = pl.pallas_call(
        functools.partial(_acc_tile_kernel, ignore_index=ignore_index,
                          total_rows=m, block_rows=tm),
        out_shape=jax.ShapeDtypeStruct((num_tiles * 8, 128), jnp.float32),
        grid=(num_tiles,),
        in_specs=[
            pl.BlockSpec((tm, c), lambda i: (i, 0)),
            pl.BlockSpec((tm, 1), lambda i: (i, 0)),
        ],
        out_specs=pl.BlockSpec((8, 128), lambda i: (i, 0)),
        compiler_params=pltpu.CompilerParams(
            dimension_semantics=("parallel",),
            vmem_limit_bytes=32 * 1024 * 1024),
    )(yp, yt)

    correct_total = jnp.sum(partial[:, 0])
    weight_total = jnp.sum(partial[:, 1])
    if reduction == 'mean':
        # NOTE: if every label equals ignore_index this is 0/0 -> NaN,
        # matching the PyTorch reference behavior.
        return (correct_total / weight_total) * 100.0
    return correct_total * 100.0


def _reference(y_pred, y_true, *, ignore_index=-100, reduction='mean'):
    pred = jnp.argmax(y_pred, axis=1)
    weights = (y_true != ignore_index).astype(jnp.float32)
    acc = (pred == y_true).astype(jnp.float32) * weights
    if reduction in ('mean', 'sum'):
        acc = jnp.sum(acc)
    if reduction == 'mean':
        acc = acc / jnp.sum(weights)
    return acc * 100.0


if __name__ == "__main__":
    key = jax.random.PRNGKey(0)
    k1, k2, k3, k4 = jax.random.split(key, 4)

    # Case 1: plain 2D (N, C), single tile, f32.
    N, C = 8, 16
    yp1 = jax.random.normal(k1, (N, C), dtype=jnp.float32)
    yt1 = jax.random.randint(k2, (N,), 0, C, dtype=jnp.int32).at[3].set(-100)
    got1 = accuracy(yp1, yt1)
    want1 = _reference(yp1, yt1)

    # Case 2: 2D bf16 logits, forced multi-tile grid with a partial last tile.
    M2, C2 = 40, 16
    yp2 = jax.random.normal(k3, (M2, C2), dtype=jnp.float32).astype(jnp.bfloat16)
    yt2 = jax.random.randint(k4, (M2,), 0, C2, dtype=jnp.int32)
    yt2 = yt2.at[0].set(-100).at[17].set(-100)
    got2 = accuracy(yp2, yt2, block_rows=16)
    want2 = _reference(yp2, yt2)

    # Case 3: K-dimensional input (N, C, d1, d2), reduction='sum'.
    ka, kb = jax.random.split(k1)
    yp3 = jax.random.normal(ka, (2, 4, 8, 8), dtype=jnp.float32)
    yt3 = jax.random.randint(kb, (2, 8, 8), 0, 4, dtype=jnp.int32)
    yt3 = yt3.at[0, 0, 0].set(-100)
    got3 = accuracy(yp3, yt3, reduction='sum')
    want3 = _reference(yp3, yt3, reduction='sum')

    got1, got2, got3 = jax.block_until_ready((got1, got2, got3))

    assert jnp.allclose(got1, want1, atol=1e-4), (got1, want1)
    assert jnp.allclose(got2, want2, atol=1e-4), (got2, want2)
    assert jnp.allclose(got3, want3, atol=1e-4), (got3, want3)
    print("KERNEL_OK")
</pallas_src>

<mosaic_0001>
module attributes {stable_mosaic.version = 11 : i64} {
  func.func @_acc_tile_kernel(%arg0: i32, %arg1: memref<8x16xf32, #tpu.memory_space<vmem>>, %arg2: memref<8x1xi32, #tpu.memory_space<vmem>>, %arg3: memref<8x128xf32, #tpu.memory_space<vmem>>) attributes {dimension_semantics = [#tpu.dimension_semantics<parallel>], iteration_bounds = array<i64: 1>, scalar_prefetch = 0 : i64, scratch_operands = 0 : i64, tpu.core_type = #tpu.core_type<tc>, window_params = [{transform_indices = @transform_0, window_bounds = array<i64: 8, 16>}, {transform_indices = @transform_1, window_bounds = array<i64: 8, 1>}, {transform_indices = @transform_2, window_bounds = array<i64: 8, 128>}]} {
    %c0 = arith.constant 0 : index
    %c0_0 = arith.constant 0 : index
    %0 = vector.load %arg1[%c0, %c0_0] : memref<8x16xf32, #tpu.memory_space<vmem>>, vector<8x16xf32>
    %c0_1 = arith.constant 0 : index
    %c0_2 = arith.constant 0 : index
    %1 = vector.load %arg2[%c0_1, %c0_2] : memref<8x1xi32, #tpu.memory_space<vmem>>, vector<8x1xi32>
    %2 = tpu.iota {dimensions = array<i32: 1>} : vector<8x16xi32>
    %cst = arith.constant dense<0xFF800000> : vector<8xf32>
    %3 = vector.multi_reduction <maximumf>, %0, %cst [1] : vector<8x16xf32> to vector<8xf32>
    %4 = vector.shape_cast %3 : vector<8xf32> to vector<8x1xf32>
    %5 = vector.broadcast %4 : vector<8x1xf32> to vector<8x16xf32>
    %6 = arith.cmpf oeq, %0, %5 : vector<8x16xf32>
    %c16_i32 = arith.constant 16 : i32
    %7 = vector.broadcast %c16_i32 : i32 to vector<8x16xi32>
    %8 = arith.select %6, %2, %7 : vector<8x16xi1>, vector<8x16xi32>
    %cst_3 = arith.constant dense<2147483647> : vector<8xi32>
    %9 = vector.multi_reduction <minsi>, %8, %cst_3 [1] : vector<8x16xi32> to vector<8xi32>
    %10 = vector.shape_cast %9 : vector<8xi32> to vector<8x1xi32>
    %11 = tpu.iota {dimensions = array<i32: 0>} : vector<8x1xi32>
    %c8_i32 = arith.constant 8 : i32
    %12 = arith.muli %arg0, %c8_i32 : i32
    %13 = vector.broadcast %12 : i32 to vector<8x1xi32>
    %14 = arith.addi %11, %13 : vector<8x1xi32>
    %c-100_i32 = arith.constant -100 : i32
    %15 = vector.broadcast %c-100_i32 : i32 to vector<8x1xi32>
    %16 = arith.cmpi ne, %1, %15 : vector<8x1xi32>
    %c8_i32_4 = arith.constant 8 : i32
    %17 = vector.broadcast %c8_i32_4 : i32 to vector<8x1xi32>
    %18 = arith.cmpi slt, %14, %17 : vector<8x1xi32>
    %19 = arith.andi %16, %18 : vector<8x1xi1>
    %cst_5 = arith.constant 1.000000e+00 : f32
    %cst_6 = arith.constant 0.000000e+00 : f32
    %20 = vector.broadcast %cst_5 : f32 to vector<8x1xf32>
    %21 = vector.broadcast %cst_6 : f32 to vector<8x1xf32>
    %22 = arith.select %19, %20, %21 : vector<8x1xi1>, vector<8x1xf32>
    %23 = arith.cmpi eq, %10, %1 : vector<8x1xi32>
    %cst_7 = arith.constant 1.000000e+00 : f32
    %cst_8 = arith.constant 0.000000e+00 : f32
    %24 = vector.broadcast %cst_7 : f32 to vector<8x1xf32>
    %25 = vector.broadcast %cst_8 : f32 to vector<8x1xf32>
    %26 = arith.select %23, %24, %25 : vector<8x1xi1>, vector<8x1xf32>
    %27 = arith.mulf %26, %22 : vector<8x1xf32>
    %cst_9 = arith.constant dense<0.000000e+00> : vector<1xf32>
    %28 = vector.multi_reduction <add>, %27, %cst_9 [0] : vector<8x1xf32> to vector<1xf32>
    %29 = vector.shape_cast %28 : vector<1xf32> to vector<1x1xf32>
    %cst_10 = arith.constant dense<0.000000e+00> : vector<1xf32>
    %30 = vector.multi_reduction <add>, %22, %cst_10 [0] : vector<8x1xf32> to vector<1xf32>
    %31 = vector.shape_cast %30 : vector<1xf32> to vector<1x1xf32>
    %32 = tpu.iota {dimensions = array<i32: 1>} : vector<8x128xi32>
    %33 = tpu.iota {dimensions = array<i32: 0>} : vector<8x128xi32>
    %c0_i32 = arith.constant 0 : i32
    %34 = vector.broadcast %c0_i32 : i32 to vector<8x128xi32>
    %35 = arith.cmpi eq, %33, %34 : vector<8x128xi32>
    %c0_i32_11 = arith.constant 0 : i32
    %36 = vector.broadcast %c0_i32_11 : i32 to vector<8x128xi32>
    %37 = arith.cmpi eq, %32, %36 : vector<8x128xi32>
    %38 = arith.andi %35, %37 : vector<8x128xi1>
    %cst_12 = arith.constant 0.000000e+00 : f32
    %39 = vector.shape_cast %29 : vector<1x1xf32> to vector<1x1xf32>
    %40 = vector.broadcast %39 : vector<1x1xf32> to vector<8x128xf32>
    %41 = vector.broadcast %cst_12 : f32 to vector<8x128xf32>
    %42 = arith.select %38, %40, %41 : vector<8x128xi1>, vector<8x128xf32>
    %c1_i32 = arith.constant 1 : i32
    %43 = vector.broadcast %c1_i32 : i32 to vector<8x128xi32>
    %44 = arith.cmpi eq, %32, %43 : vector<8x128xi32>
    %45 = arith.andi %35, %44 : vector<8x128xi1>
    %cst_13 = arith.constant 0.000000e+00 : f32
    %46 = vector.shape_cast %31 : vector<1x1xf32> to vector<1x1xf32>
    %47 = vector.broadcast %46 : vector<1x1xf32> to vector<8x128xf32>
    %48 = vector.broadcast %cst_13 : f32 to vector<8x128xf32>
    %49 = arith.select %45, %47, %48 : vector<8x128xi1>, vector<8x128xf32>
    %50 = arith.addf %42, %49 : vector<8x128xf32>
    %c0_14 = arith.constant 0 : index
    %c0_15 = arith.constant 0 : index
    %51 = vector.load %arg3[%c0_14, %c0_15] : memref<8x128xf32, #tpu.memory_space<vmem>>, vector<8x128xf32>
    tpu.vector_store %arg3[%c0_14, %c0_15], %50 {strides = array<i32>} : memref<8x128xf32, #tpu.memory_space<vmem>>, vector<8x128xf32>,
    return
  }
  func.func @transform_0(%arg0: i32) -> (i32, i32) {
    %c0_i32 = arith.constant 0 : i32
    %c0_i32_0 = arith.constant 0 : i32
    return %arg0, %c0_i32 : i32, i32
  }
  func.func @transform_1(%arg0: i32) -> (i32, i32) {
    %c0_i32 = arith.constant 0 : i32
    %c0_i32_0 = arith.constant 0 : i32
    return %arg0, %c0_i32 : i32, i32
  }
  func.func @transform_2(%arg0: i32) -> (i32, i32) {
    %c0_i32 = arith.constant 0 : i32
    %c0_i32_0 = arith.constant 0 : i32
    return %arg0, %c0_i32 : i32, i32
  }
}

</mosaic_0001>

<bundles_post_ra>
// kernel: tpu_custom_call.1
= control target key start
LH: loop header
LB: loop body
LE: loop exit
PB: predicated region body
PF: predicated region fallthrough
CT: control target
= control target key end

     0   :  { %vm16_vm0 = vcmask 130048   ;;  %s153_s0 = inlined_call_operand.vmem [shape: f32[8,16], index: 0, kind: input, shape index: {}]   ;;  %s154_s1 = inlined_call_operand.vmem [shape: s32[8,1], index: 1, kind: input, shape index: {}]   ;;  %s155_s2 = inlined_call_operand.hbm [shape: f32[8,128], index: 2, kind: output, shape index: {}]  }
   0x1   :  { %v12_v0 = vld [vmem:[%s153_s0] sm:$0xff] }
   0x2   :  { %7 = vsyncpa [#allocation3], 0  ;;  %v17_v1 = vsel %vm16_vm0, %v12_v0, -inf  ;;  %v14_v2 = vlaneseq  ;;  %v13_v13 = vld [vmem:[%s154_s1] sm:$0xff]  ;;  %vm49_vm4 = vcmask 7168   ;;  %v124_v14 = vmov 0.0  }
   0x3   :  { %18 = vmax.xlane.f32.xlu0 %v17_v1  ;;  %vm42_vm3 = vcmp.ne.s32.totalorder %v13_v13, 4294967196  ;;  %v125_v19 = vmov 0   ;;  %s126_s1 = smov [#allocation2]  }
   0x4   :  { %v15_v3 = vand.u32 127, %v14_v2  ;;  %v45_v15 = vsel %vm42_vm3, 1.0, %v124_v14  ;;  %101 = vset.pattern.permute.xlu0 %v125_v19  ;;  %100 = vset.pattern.permute.xlu1 %v125_v19  ;;  %v38_v38 = vshrl.u32 %v14_v2, 7  ;;  %s89_s12 = sshll.u32 %s126_s1, 4  ;;  %s90_s12 = int_to_ptr.vmem [resolvable:$true] %s89_s12 }
   0x5   :  { %v57_v16 = vsel %vm49_vm4, %v45_v15, 0.0  ;;  %s102_s13 = scalar_lea.vmem %s90_s12, 128  ;;  %p107_p1 = scmp.lt.s32.totalorder %s90_s12, %s90_s12 }
   0x6   :  { %v58_v17 = vrot.slane %v57_v16, 4  ;;  %vm64_vm6 = vcmp.eq.s32.totalorder %v38_v38, 0  ;;  %vm73_vm7 = vcmp.eq.s32.totalorder %v15_v3, 1  ;;  %vm65_vm8 = vcmp.eq.s32.totalorder %v15_v3, 0  ;;  %p103_p0 = scmp.ne.s32.totalorder %s90_s12, %s102_s13  ;;  %p108_p2 = scmp.lt.s32.totalorder %s102_s13, %s102_s13 }
   0x7   :  { %vm74_vm9 = vmand %vm64_vm6, %vm73_vm7 }
   0x8   :  { %v59_v18 = vadd.f32 %v58_v17, %v57_v16  ;;  %vm66_vm10 = vmand %vm64_vm6, %vm65_vm8  ;;  %p109_p3 = por %p108_p2, %p107_p1 }
   0xa   :  { %v60_v20 = vrot.slane %v59_v18, 2  ;;  %p110_p4 = pnand %p109_p3, %p103_p0 }
   0xc   :  { %v61_v21 = vadd.f32 %v60_v20, %v59_v18 }
   0xe   :  { %v62_v22 = vrot.slane %v61_v21, 1 }
  0x10   :  { %v63_v23 = vadd.f32 %v62_v22, %v61_v21 }
  0x8c   :  { %v19_v4 = vpop.xlane.xlu0 %18 }
  0x8d   :  { %vm20_vm1 = vcmp.eq.f32.partialorder %v12_v0, %v19_v4 }
  0x8e   :  { %v21_v5 = vsel %vm20_vm1, %v15_v3, 16 }
  0x8f   :  { %v22_v6 = vsel %vm16_vm0, %v21_v5, 2147483647 }
  0x90   :  { %v24_v7 = vshra.s32 %v22_v6, 16  ;;  %v23_v9 = vand.u32 65535, %v22_v6 }
  0x92   :  { %v26_v8 = vcvt.s32.f32 %v24_v7  ;;  %v25_v11 = vcvt.s32.f32 %v23_v9 }
  0x94   :  { %27 = vmin.xlane.f32.xlu0 %v26_v8 }
  0xaa   :  { %77 = vperm.xlu0 %101, %v63_v23  }
 0x11d   :  { %v28_v10 = vpop.xlane.xlu0 %27 }
 0x11e   :  { %vm29_vm2 = vcmp.eq.f32.partialorder %v26_v8, %v28_v10  ;;  %v34_v24 = vcvt.f32.s32 %v28_v10 }
 0x11f   :  { %v30_v12 = vsel %vm29_vm2, %v25_v11, inf }
 0x120   :  { %31 = vmin.xlane.f32.xlu1 %v30_v12  ;;  %v35_v26 = vshll.u32 %v34_v24, 16 }
 0x125   :  { %v78_v39 = vpop.permute.xlu0 %77 }
 0x126   :  { %v80_v40 = vsel %vm74_vm9, %v78_v39, 0.0 }
 0x1a9   :  { %v32_v25 = vpop.xlane.xlu1 %31 }
 0x1aa   :  { %v33_v27 = vcvt.f32.s32 %v32_v25 }
 0x1ac   :  { %v36_v28 = vadd.s32 %v35_v26, %v33_v27 }
 0x1ae   :  { %vm46_vm5 = vcmp.eq.s32.totalorder %v36_v28, %v13_v13 }
 0x1af   :  { %v47_v29 = vsel %vm46_vm5, 1.0, %v124_v14 }
 0x1b0   :  { %v48_v30 = vmul.f32 %v47_v29, %v45_v15 }
 0x1b2   :  { %v50_v31 = vsel %vm49_vm4, %v48_v30, 0.0 }
 0x1b3   :  { %v51_v32 = vrot.slane %v50_v31, 4 }
 0x1b5   :  { %v52_v33 = vadd.f32 %v51_v32, %v50_v31 }
 0x1b7   :  { %v53_v34 = vrot.slane %v52_v33, 2 }
 0x1b9   :  { %v54_v35 = vadd.f32 %v53_v34, %v52_v33 }
 0x1bb   :  { %v55_v36 = vrot.slane %v54_v35, 1 }
 0x1bd   :  { %v56_v37 = vadd.f32 %v55_v36, %v54_v35 }
 0x1bf   :  { %69 = vperm.xlu1 %100, %v56_v37  }
 0x23a   :  { %v70_v41 = vpop.permute.xlu1 %69 }
 0x23b   :  { %v72_v42 = vsel %vm66_vm10, %v70_v41, 0.0 }
 0x23c   :  { %v81_v43 = vadd.f32 %v80_v40, %v72_v42 }
 0x23e   :  { %82 = vst [vmem:[#allocation2] sm:$0xff] %v81_v43 }
 0x23f   :  { %113 = shalt.err (!%p110_p4)
}
 0x240   :  { %92 = dma.vmem_to_hbm [thread:$0]  %s90_s12, 128, %s155_s2, [#allocation3]  }
 0x241   :  { %122 = dma.done.wait [#allocation3], 128  }
 0x242   :  { %123 = vsyncadd [#allocation3], 4294967168 }
 0x243   :  { %96 = vsyncpa [#allocation3], 1 }

</bundles_post_ra>
